<compile_context>
chip_gen: v7x
topology: tpu7x:2x2x1
jax: 0.10.0
libtpu: 0.0.40
codegen_flags: <defaults>
</compile_context>

<pallas_src>
import jax
import jax.numpy as jnp
from jax.experimental import pallas as pl
from jax.experimental.pallas import tpu as pltpu

LANE = 128     # lane width (last-dim tiling)
SUBLANE = 8    # sublane width (second-to-last-dim tiling)
NEG_INF = -1e30


def _round_up(v, m):
    return (v + m - 1) // m * m


def _pad2(a, rows, cols):
    r, c = a.shape
    return jnp.pad(a, ((0, rows - r), (0, cols - c)))


# ----------------------------------------------------------------------------
# Fused Pallas kernel: all (folded) GIN layers + mean pool + Linear + softmax
# ----------------------------------------------------------------------------
def _make_fused_kernel(num_layers, blk):
    """Refs: a_hat(bf16), x(f32), pool(f32), w_slab(bf16), b_slab(f32), out(f32)."""

    def kernel(a_ref, x_ref, p_ref, w_ref, b_ref, o_ref):
        h = x_ref[...]                                    # f32 activations, VMEM-resident
        for l in range(num_layers):                       # unrolled; static slab offsets
            w = w_ref[pl.ds(l * blk, blk), :]             # (blk, blk) bf16 folded weight
            b = b_ref[pl.ds(l, 1), :]                     # (1, blk)   f32 folded bias
            # GINConv: nn((1+eps)x + sum_j x_j); (1+eps)I folded into A_hat on the host,
            # the two activation-free Linears folded into (w, b) on the host.
            agg = jnp.dot(a_ref[...], h.astype(jnp.bfloat16),
                          preferred_element_type=jnp.float32)          # bf16 MXU, f32 acc
            z = jnp.dot(agg.astype(jnp.bfloat16), w,
                        preferred_element_type=jnp.float32) + b
            h = jnp.maximum(z, 0.0)                       # ReLU after each GINConv

        wf = w_ref[pl.ds(num_layers * blk, blk), :]       # final classifier weight (bf16)
        bf = b_ref[pl.ds(num_layers, 1), :]               # final bias (-1e30 in padded cols)
        # Global mean pool (tiny (8 x n_pad) matmul -> keep f32 for exact 1/count weights).
        pooled = jnp.dot(p_ref[...], h, preferred_element_type=jnp.float32)
        logits = jnp.dot(pooled.astype(jnp.bfloat16), wf,
                         preferred_element_type=jnp.float32) + bf       # dropout(eval)=id
        m = jnp.max(logits, axis=-1, keepdims=True)
        e = jnp.exp(logits - m)                           # padded classes: bias -1e30 -> 0
        inv = pl.reciprocal(jnp.sum(e, axis=-1, keepdims=True), approx=True)
        o_ref[...] = (e * inv).astype(o_ref.dtype)

    return kernel


_VMEM = pl.BlockSpec(memory_space=pltpu.MemorySpace.VMEM)


def _derive_vmem_limit(operands, out_bytes):
    """Scoped VMEM limit from the actual padded operand sizes, capped at device capacity."""
    total = sum(int(a.size) * a.dtype.itemsize for a in operands) + int(out_bytes)
    want = 2 * total + (8 << 20)                 # double-buffer headroom + compiler scratch
    try:
        cap = int(pltpu.get_tpu_info().vmem_capacity_bytes)
    except Exception:                            # pragma: no cover - conservative fallback
        cap = 64 << 20                           # v7x per-TC capacity: safe everywhere
    return int(min(want, int(cap * 0.9)))


def _fused_forward(a_hat, x_pad, pool_mat, w_slab, b_slab, num_layers, blk):
    g_pad = pool_mat.shape[0]
    operands = (a_hat, x_pad, pool_mat, w_slab, b_slab)
    limit = _derive_vmem_limit(operands, g_pad * blk * 4)
    return pl.pallas_call(
        _make_fused_kernel(num_layers, blk),
        out_shape=jax.ShapeDtypeStruct((g_pad, blk), jnp.float32),
        in_specs=[_VMEM] * len(operands),
        out_specs=_VMEM,
        compiler_params=pltpu.CompilerParams(vmem_limit_bytes=limit),
    )(*operands)


# ----------------------------------------------------------------------------
# Parameters
# ----------------------------------------------------------------------------
def init_params(key, dim_node, dim_hidden, num_classes):
    """Deterministic init mimicking torch.nn.Linear default (uniform +-1/sqrt(fan_in)).

    Weights stored transposed (in, out) so the math is X @ W; biases as (1, out).
    """
    dims_in = [dim_node] + list(dim_hidden[:-1])
    dims_out = list(dim_hidden)
    params = {"layers": []}
    for d_in, d_out in zip(dims_in, dims_out):
        d_mid = (d_in + d_out) // 2
        key, k1, k2, k3, k4 = jax.random.split(key, 5)
        bnd1 = 1.0 / jnp.sqrt(d_in)
        bnd2 = 1.0 / jnp.sqrt(d_mid)
        params["layers"].append(
            dict(
                w1=jax.random.uniform(k1, (d_in, d_mid), jnp.float32, -bnd1, bnd1),
                b1=jax.random.uniform(k2, (1, d_mid), jnp.float32, -bnd1, bnd1),
                w2=jax.random.uniform(k3, (d_mid, d_out), jnp.float32, -bnd2, bnd2),
                b2=jax.random.uniform(k4, (1, d_out), jnp.float32, -bnd2, bnd2),
            )
        )
    key, kf1, kf2 = jax.random.split(key, 3)
    bndf = 1.0 / jnp.sqrt(dim_hidden[-1])
    params["wf"] = jax.random.uniform(kf1, (dim_hidden[-1], num_classes), jnp.float32, -bndf, bndf)
    params["bf"] = jax.random.uniform(kf2, (1, num_classes), jnp.float32, -bndf, bndf)
    return params


def pad_and_fold_params(params):
    """Fold each layer's activation-free Linear pair, pad lane-dense, pack into two slabs.

    * W = w1 @ w2, b = b1 @ w2 + b2 (exact algebra; fp summation order changes slightly).
    * Weight slab ((L+1)*blk, blk) in bf16 (zero padding stays exactly zero in bf16).
    * Bias slab (rows padded to 8, blk) in f32; padded class columns of the final bias
      carry -1e30 so the in-kernel softmax ignores them.
    """
    dims = []
    for lyr in params["layers"]:
        dims += [lyr["w1"].shape[0], lyr["w1"].shape[1], lyr["w2"].shape[1]]
    dims += list(params["wf"].shape)
    blk = max(_round_up(d, LANE) for d in dims)

    w_blocks, b_blocks = [], []
    for lyr in params["layers"]:
        w = lyr["w1"] @ lyr["w2"]                     # fold (no activation between Linears)
        b = lyr["b1"] @ lyr["w2"] + lyr["b2"]
        w_blocks.append(_pad2(w, blk, blk))
        b_blocks.append(_pad2(b, 1, blk))
    num_classes = params["wf"].shape[1]
    w_blocks.append(_pad2(params["wf"], blk, blk))
    bf = jnp.full((1, blk), NEG_INF, jnp.float32).at[:, :num_classes].set(params["bf"][0])
    b_blocks.append(bf)

    w_slab = jnp.concatenate(w_blocks, axis=0).astype(jnp.bfloat16)   # ((L+1)*blk, blk)
    b_slab = jnp.concatenate(b_blocks, axis=0)                        # (L+1, blk) f32
    rows = b_slab.shape[0]
    b_slab = jnp.pad(b_slab, ((0, _round_up(rows, SUBLANE) - rows), (0, 0)))
    return dict(w_slab=w_slab, b_slab=b_slab, blk=blk, num_layers=len(params["layers"]))


# ----------------------------------------------------------------------------
# Forward (glue in plain JAX, everything hot in one Pallas kernel)
# ----------------------------------------------------------------------------
def gin_forward(folded, x, edge_index, batch, num_graphs, num_classes, eps=0.0):
    """Forward pass of GIN_no_edgefeat (eval mode). folded = pad_and_fold_params(params)."""
    w_slab, b_slab = folded["w_slab"], folded["b_slab"]
    blk, num_layers = folded["blk"], folded["num_layers"]

    n, _ = x.shape
    n_pad = _round_up(n, LANE)       # node axis is a lane dim of A_hat / pool_mat
    g_pad = _round_up(num_graphs, SUBLANE)

    src, dst = edge_index[0], edge_index[1]
    # Dense aggregation operator A_hat = A + (1+eps)I, A[dst, src] = edge multiplicity,
    # built at padded size (padded rows/cols stay 0) and shipped in bf16 (exact for small
    # integer counts and eps=0) - halves HBM/VMEM bytes of the dominant operand.
    a_hat = jnp.zeros((n_pad, n_pad), jnp.float32).at[dst, src].add(1.0)
    a_hat = a_hat.at[jnp.arange(n), jnp.arange(n)].add(1.0 + eps)
    a_hat = a_hat.astype(jnp.bfloat16)

    x_pad = _pad2(x.astype(jnp.float32), n_pad, blk)

    # Mean-pool matrix P[g, n] = 1/|graph g| if batch[n] == g (zeros in padded rows/cols).
    one_hot = (batch[None, :] == jnp.arange(num_graphs)[:, None]).astype(jnp.float32)
    counts = jnp.maximum(one_hot.sum(axis=1, keepdims=True), 1.0)
    pool_mat = _pad2(one_hot / counts, g_pad, n_pad)

    out_pad = _fused_forward(a_hat, x_pad, pool_mat, w_slab, b_slab, num_layers, blk)
    return out_pad[:num_graphs, :num_classes]


def gin_forward_reference(params, x, edge_index, batch, num_graphs, eps=0.0):
    """Pure-jnp f32 reference (matches the PyTorch module layer-by-layer)."""
    n = x.shape[0]
    src, dst = edge_index[0], edge_index[1]
    a_hat = jnp.zeros((n, n), jnp.float32).at[dst, src].add(1.0)
    a_hat = a_hat + (1.0 + eps) * jnp.eye(n, dtype=jnp.float32)
    h = x.astype(jnp.float32)
    for lyr in params["layers"]:
        h = a_hat @ h
        h = h @ lyr["w1"] + lyr["b1"]
        h = h @ lyr["w2"] + lyr["b2"]
        h = jnp.maximum(h, 0.0)
    one_hot = (batch[None, :] == jnp.arange(num_graphs)[:, None]).astype(jnp.float32)
    counts = jnp.maximum(one_hot.sum(axis=1, keepdims=True), 1.0)
    pooled = (one_hot / counts) @ h
    logits = pooled @ params["wf"] + params["bf"]
    return jax.nn.softmax(logits, axis=1)


if __name__ == "__main__":
    # Small deterministic problem: 2 graphs, 16 nodes total, 8 node features,
    # hidden sizes [16, 16], 4 classes, 40 directed edges.
    dim_node = 8
    dim_hidden = [16, 16]
    num_classes = 4
    num_nodes = 16
    num_graphs = 2
    num_edges = 40

    key = jax.random.PRNGKey(0)
    k_param, k_x, k_src, k_dst = jax.random.split(key, 4)

    params = init_params(k_param, dim_node, dim_hidden, num_classes)
    folded = pad_and_fold_params(params)   # host-side fold + pad, built once
    x = jax.random.normal(k_x, (num_nodes, dim_node), jnp.float32)

    # Nodes 0..7 -> graph 0, nodes 8..15 -> graph 1; edges stay within each graph.
    batch = jnp.concatenate([jnp.zeros(8, jnp.int32), jnp.ones(8, jnp.int32)])
    half = num_edges // 2
    src0 = jax.random.randint(k_src, (half,), 0, 8)
    dst0 = jax.random.randint(k_dst, (half,), 0, 8)
    src1 = jax.random.randint(jax.random.fold_in(k_src, 1), (half,), 8, 16)
    dst1 = jax.random.randint(jax.random.fold_in(k_dst, 1), (half,), 8, 16)
    edge_index = jnp.stack(
        [jnp.concatenate([src0, src1]), jnp.concatenate([dst0, dst1])]
    ).astype(jnp.int32)

    out = gin_forward(folded, x, edge_index, batch, num_graphs, num_classes)
    out = jax.block_until_ready(out)

    ref = gin_forward_reference(params, x, edge_index, batch, num_graphs)
    assert out.shape == (num_graphs, num_classes)
    # Kernel uses bf16 MXU inputs (f32 accumulation) and an approx-reciprocal softmax
    # divide, so compare against the f32 reference with a bf16-appropriate tolerance.
    assert jnp.allclose(out, ref, atol=3e-2), "Pallas output mismatch vs reference"
    assert jnp.allclose(out.sum(axis=1), 1.0, atol=5e-3), "softmax rows must sum to ~1"

    print("KERNEL_OK")
</pallas_src>

<mosaic_0001>
module attributes {stable_mosaic.version = 11 : i64} {
  func.func @kernel(%arg0: memref<128x128xbf16, #tpu.memory_space<vmem>>, %arg1: memref<128x128xf32, #tpu.memory_space<vmem>>, %arg2: memref<8x128xf32, #tpu.memory_space<vmem>>, %arg3: memref<384x128xbf16, #tpu.memory_space<vmem>>, %arg4: memref<8x128xf32, #tpu.memory_space<vmem>>, %arg5: memref<8x128xf32, #tpu.memory_space<vmem>>) attributes {dimension_semantics = [], scalar_prefetch = 0 : i64, scratch_operands = 0 : i64, tpu.core_type = #tpu.core_type<tc>} {
    %c0 = arith.constant 0 : index
    %c0_0 = arith.constant 0 : index
    %0 = vector.load %arg1[%c0, %c0_0] : memref<128x128xf32, #tpu.memory_space<vmem>>, vector<128x128xf32>
    %c0_1 = arith.constant 0 : index
    %c0_2 = arith.constant 0 : index
    %1 = vector.load %arg3[%c0_1, %c0_2] : memref<384x128xbf16, #tpu.memory_space<vmem>>, vector<128x128xbf16>
    %c0_3 = arith.constant 0 : index
    %c0_4 = arith.constant 0 : index
    %2 = vector.load %arg4[%c0_3, %c0_4] : memref<8x128xf32, #tpu.memory_space<vmem>>, vector<1x128xf32>
    %c0_5 = arith.constant 0 : index
    %c0_6 = arith.constant 0 : index
    %3 = vector.load %arg0[%c0_5, %c0_6] : memref<128x128xbf16, #tpu.memory_space<vmem>>, vector<128x128xbf16>
    %4 = arith.truncf %0 : vector<128x128xf32> to vector<128x128xbf16>
    %cst = arith.constant dense<0.000000e+00> : vector<128x128xf32>
    %5 = tpu.matmul %3, %4, %cst {dimension_numbers = #tpu.dot_dimension_numbers<[1], [0], [0], [1], [0, 0, 1, 1], [], []>} : vector<128x128xbf16>, vector<128x128xbf16>, vector<128x128xf32> -> vector<128x128xf32>
    %6 = arith.truncf %5 : vector<128x128xf32> to vector<128x128xbf16>
    %cst_7 = arith.constant dense<0.000000e+00> : vector<128x128xf32>
    %7 = tpu.matmul %6, %1, %cst_7 {dimension_numbers = #tpu.dot_dimension_numbers<[1], [0], [0], [1], [0, 0, 1, 1], [], []>} : vector<128x128xbf16>, vector<128x128xbf16>, vector<128x128xf32> -> vector<128x128xf32>
    %8 = vector.broadcast %2 : vector<1x128xf32> to vector<128x128xf32>
    %9 = arith.addf %7, %8 : vector<128x128xf32>
    %cst_8 = arith.constant 0.000000e+00 : f32
    %10 = vector.broadcast %cst_8 : f32 to vector<128x128xf32>
    %11 = arith.maximumf %9, %10 : vector<128x128xf32>
    %c128 = arith.constant 128 : index
    %c0_9 = arith.constant 0 : index
    %12 = vector.load %arg3[%c128, %c0_9] : memref<384x128xbf16, #tpu.memory_space<vmem>>, vector<128x128xbf16>
    %c1 = arith.constant 1 : index
    %c0_10 = arith.constant 0 : index
    %13 = vector.load %arg4[%c1, %c0_10] : memref<8x128xf32, #tpu.memory_space<vmem>>, vector<1x128xf32>
    %c0_11 = arith.constant 0 : index
    %c0_12 = arith.constant 0 : index
    %14 = vector.load %arg0[%c0_11, %c0_12] : memref<128x128xbf16, #tpu.memory_space<vmem>>, vector<128x128xbf16>
    %15 = arith.truncf %11 : vector<128x128xf32> to vector<128x128xbf16>
    %cst_13 = arith.constant dense<0.000000e+00> : vector<128x128xf32>
    %16 = tpu.matmul %14, %15, %cst_13 {dimension_numbers = #tpu.dot_dimension_numbers<[1], [0], [0], [1], [0, 0, 1, 1], [], []>} : vector<128x128xbf16>, vector<128x128xbf16>, vector<128x128xf32> -> vector<128x128xf32>
    %17 = arith.truncf %16 : vector<128x128xf32> to vector<128x128xbf16>
    %cst_14 = arith.constant dense<0.000000e+00> : vector<128x128xf32>
    %18 = tpu.matmul %17, %12, %cst_14 {dimension_numbers = #tpu.dot_dimension_numbers<[1], [0], [0], [1], [0, 0, 1, 1], [], []>} : vector<128x128xbf16>, vector<128x128xbf16>, vector<128x128xf32> -> vector<128x128xf32>
    %19 = vector.broadcast %13 : vector<1x128xf32> to vector<128x128xf32>
    %20 = arith.addf %18, %19 : vector<128x128xf32>
    %cst_15 = arith.constant 0.000000e+00 : f32
    %21 = vector.broadcast %cst_15 : f32 to vector<128x128xf32>
    %22 = arith.maximumf %20, %21 : vector<128x128xf32>
    %c256 = arith.constant 256 : index
    %c0_16 = arith.constant 0 : index
    %23 = vector.load %arg3[%c256, %c0_16] : memref<384x128xbf16, #tpu.memory_space<vmem>>, vector<128x128xbf16>
    %c2 = arith.constant 2 : index
    %c0_17 = arith.constant 0 : index
    %24 = vector.load %arg4[%c2, %c0_17] : memref<8x128xf32, #tpu.memory_space<vmem>>, vector<1x128xf32>
    %c0_18 = arith.constant 0 : index
    %c0_19 = arith.constant 0 : index
    %25 = vector.load %arg2[%c0_18, %c0_19] : memref<8x128xf32, #tpu.memory_space<vmem>>, vector<8x128xf32>
    %cst_20 = arith.constant dense<0.000000e+00> : vector<8x128xf32>
    %26 = tpu.matmul %25, %22, %cst_20 {dimension_numbers = #tpu.dot_dimension_numbers<[1], [0], [0], [1], [0, 0, 1, 1], [], []>} : vector<8x128xf32>, vector<128x128xf32>, vector<8x128xf32> -> vector<8x128xf32>
    %27 = arith.truncf %26 : vector<8x128xf32> to vector<8x128xbf16>
    %cst_21 = arith.constant dense<0.000000e+00> : vector<8x128xf32>
    %28 = tpu.matmul %27, %23, %cst_21 {dimension_numbers = #tpu.dot_dimension_numbers<[1], [0], [0], [1], [0, 0, 1, 1], [], []>} : vector<8x128xbf16>, vector<128x128xbf16>, vector<8x128xf32> -> vector<8x128xf32>
    %29 = vector.broadcast %24 : vector<1x128xf32> to vector<8x128xf32>
    %30 = arith.addf %28, %29 : vector<8x128xf32>
    %cst_22 = arith.constant dense<0xFF800000> : vector<8xf32>
    %31 = vector.multi_reduction <maximumf>, %30, %cst_22 [1] : vector<8x128xf32> to vector<8xf32>
    %32 = vector.shape_cast %31 : vector<8xf32> to vector<8x1xf32>
    %33 = vector.broadcast %32 : vector<8x1xf32> to vector<8x128xf32>
    %34 = arith.subf %30, %33 : vector<8x128xf32>
    %35 = math.exp %34 : vector<8x128xf32>
    %cst_23 = arith.constant dense<0.000000e+00> : vector<8xf32>
    %36 = vector.multi_reduction <add>, %35, %cst_23 [1] : vector<8x128xf32> to vector<8xf32>
    %37 = vector.shape_cast %36 : vector<8xf32> to vector<8x1xf32>
    %38 = tpu.reciprocal %37 {approx = true} : vector<8x1xf32> -> vector<8x1xf32>
    %39 = vector.broadcast %38 : vector<8x1xf32> to vector<8x128xf32>
    %40 = arith.mulf %35, %39 : vector<8x128xf32>
    %c0_24 = arith.constant 0 : index
    %c0_25 = arith.constant 0 : index
    %41 = vector.load %arg5[%c0_24, %c0_25] : memref<8x128xf32, #tpu.memory_space<vmem>>, vector<8x128xf32>
    tpu.vector_store %arg5[%c0_24, %c0_25], %40 {strides = array<i32>} : memref<8x128xf32, #tpu.memory_space<vmem>>, vector<8x128xf32>,
    return
  }
}

</mosaic_0001>

<bundles_post_ra>
// kernel: tpu_custom_call.1
= control target key start
LH: loop header
LB: loop body
LE: loop exit
PB: predicated region body
PF: predicated region fallthrough
CT: control target
= control target key end

     0   :  { %10 = vsyncpa [#allocation3], 0  ;;  %s1611_s0 = inlined_call_operand.hbm [shape: bf16[128,128], index: 0, kind: input, shape index: {}]   ;;  %s1612_s1 = inlined_call_operand.hbm [shape: f32[128,128], index: 1, kind: input, shape index: {}]   ;;  %s1613_s2 = inlined_call_operand.hbm [shape: f32[8,128], index: 2, kind: input, shape index: {}]   ;;  %s1614_s3 = inlined_call_operand.hbm [shape: bf16[384,128], index: 3, kind: input, shape index: {}]   ;;  %s1615_s4 = inlined_call_operand.vmem [shape: f32[8,128], index: 4, kind: input, shape index: {}]   ;;  %s1616_s5 = inlined_call_operand.hbm [shape: f32[8,128], index: 5, kind: output, shape index: {}]  }
   0x1   :  { %11 = vsyncpa [#allocation6], 0 }
   0x2   :  { %12 = vsyncpa [#allocation9], 0 }
   0x3   :  { %13 = vsyncpa [#allocation4], 0  ;;  %s1451_s18 = smov [#allocation5]   ;;  %s1333_s22 = scalar_lea.hbm %s1612_s1, 2048 }
   0x4   :  { %s31_s19 = sshll.u32 %s1451_s18, 4  ;;  %p1334_p0 = scmp.ne.s32.totalorder %s1612_s1, %s1333_s22  ;;  %s32_s19 = int_to_ptr.vmem [resolvable:$true] %s31_s19 }
   0x5   :  { %p1337_p1 = scmp.lt.u32.totalorder %s1333_s22, %s1612_s1 }
   0x7   :  { %p1339_p2 = pnand %p1337_p1, %p1334_p0 }
   0x9   :  { %1342 = shalt.err (!%p1339_p2)
}
   0xa   :  { %s1343_s27 = scalar_lea.vmem %s32_s19, 2048  ;;  %p1348_p4 = scmp.lt.s32.totalorder %s32_s19, %s32_s19 }
   0xb   :  { %p1344_p3 = scmp.ne.s32.totalorder %s32_s19, %s1343_s27  ;;  %p1349_p5 = scmp.lt.s32.totalorder %s1343_s27, %s1343_s27 }
   0xd   :  { %p1350_p6 = por %p1349_p5, %p1348_p4 }
   0xf   :  { %p1351_p7 = pnand %p1350_p6, %p1344_p3 }
  0x11   :  { %1354 = shalt.err (!%p1351_p7)
}
  0x12   :  { %s1452_s28 = smov 128   ;;  %s1453_s29 = smov 8  }
  0x13   :  { %37 = dma.hbm_to_vmem [thread:$0]  %s1612_s1, 2048, %s32_s19, [#allocation6], %s1452_s28, %s1452_s28, %s1453_s29  }
  0x14   :  { %s1454_s7 = smov [#allocation2]   ;;  %s1355_s11 = scalar_lea.hbm %s1611_s0, 1024 }
  0x15   :  { %s19_s8 = sshll.u32 %s1454_s7, 4  ;;  %p1356_p8 = scmp.ne.s32.totalorder %s1611_s0, %s1355_s11  ;;  %s20_s8 = int_to_ptr.vmem [resolvable:$true] %s19_s8 }
  0x16   :  { %p1359_p9 = scmp.lt.u32.totalorder %s1355_s11, %s1611_s0 }
  0x18   :  { %p1361_p10 = pnand %p1359_p9, %p1356_p8 }
  0x1a   :  { %1364 = shalt.err (!%p1361_p10)
}
  0x1b   :  { %s1365_s16 = scalar_lea.vmem %s20_s8, 1024  ;;  %p1370_p12 = scmp.lt.s32.totalorder %s20_s8, %s20_s8 }
  0x1c   :  { %p1366_p11 = scmp.ne.s32.totalorder %s20_s8, %s1365_s16  ;;  %p1371_p13 = scmp.lt.s32.totalorder %s1365_s16, %s1365_s16 }
  0x1e   :  { %p1372_p0 = por %p1371_p13, %p1370_p12 }
  0x20   :  { %p1373_p1 = pnand %p1372_p0, %p1366_p11 }
  0x22   :  { %1376 = shalt.err (!%p1373_p1)
}
  0x23   :  { %s1455_s1 = smov 64   ;;  %s1456_s17 = smov 4  }
  0x24   :  { %25 = dma.hbm_to_vmem [thread:$0]  %s1611_s0, 1024, %s20_s8, [#allocation3], %s1455_s1, %s1455_s1, %s1456_s17  }
  0x25   :  { %s1457_s20 = smov [#allocation7]   ;;  %s1458_s22 = smov [#allocation8]  }
  0x26   :  { %s44_s21 = sshll.u32 %s1457_s20, 4  ;;  %s53_s23 = sshll.u32 %s1458_s22, 4  ;;  %s45_s21 = int_to_ptr.vmem [resolvable:$true] %s44_s21  ;;  %s1520_s23 = int_to_ptr.vmem [resolvable:$true] %s53_s23 }
  0x27   :  { %s1377_s26 = scalar_lea.hbm %s1613_s2, 128 }
  0x28   :  { %p1378_p2 = scmp.ne.s32.totalorder %s1613_s2, %s1377_s26  ;;  %p1381_p3 = scmp.lt.u32.totalorder %s1377_s26, %s1613_s2 }
  0x2a   :  { %p1383_p4 = pnand %p1381_p3, %p1378_p2 }
  0x2c   :  { %1386 = shalt.err (!%p1383_p4)
}
  0x2d   :  { %s1387_s0 = scalar_lea.vmem %s45_s21, 128  ;;  %p1392_p6 = scmp.lt.s32.totalorder %s45_s21, %s45_s21 }
  0x2e   :  { %p1388_p5 = scmp.ne.s32.totalorder %s45_s21, %s1387_s0  ;;  %p1393_p7 = scmp.lt.s32.totalorder %s1387_s0, %s1387_s0 }
  0x30   :  { %p1394_p8 = por %p1393_p7, %p1392_p6 }
  0x32   :  { %p1395_p9 = pnand %p1394_p8, %p1388_p5 }
  0x34   :  { %1398 = shalt.err (!%p1395_p9)
}
  0x35   :  { %47 = dma.hbm_to_vmem [thread:$0]  %s1613_s2, 128, %s45_s21, [#allocation6]  }
  0x36   :  { %s1399_s10 = scalar_lea.hbm %s1614_s3, 3072 }
  0x37   :  { %p1400_p10 = scmp.ne.s32.totalorder %s1614_s3, %s1399_s10  ;;  %p1403_p11 = scmp.lt.u32.totalorder %s1399_s10, %s1614_s3 }
  0x39   :  { %p1405_p12 = pnand %p1403_p11, %p1400_p10 }
  0x3b   :  { %1408 = shalt.err (!%p1405_p12)
}
  0x3c   :  { %s1409_s15 = scalar_lea.vmem %s1520_s23, 3072  ;;  %p1414_p0 = scmp.lt.s32.totalorder %s1520_s23, %s1520_s23 }
  0x3d   :  { %p1410_p13 = scmp.ne.s32.totalorder %s1520_s23, %s1409_s15  ;;  %p1415_p1 = scmp.lt.s32.totalorder %s1409_s15, %s1409_s15 }
  0x3f   :  { %p1416_p2 = por %p1415_p1, %p1414_p0 }
  0x41   :  { %p1417_p3 = pnand %p1416_p2, %p1410_p13 }
  0x43   :  { %1420 = shalt.err (!%p1417_p3)
}
  0x44   :  { %59 = dma.hbm_to_vmem [thread:$0]  %s1614_s3, 3072, %s1520_s23, [#allocation9], %s1455_s1, %s1455_s1, %s1456_s17  }
  0x45   :  { %1443 = dma.done.wait [#allocation3], 1024  }
  0x46   :  { %1444 = vsyncadd [#allocation3], 4294966272 }
  0x47   :  { %1445 = dma.done.wait [#allocation6], 2176  }
  0x48   :  { %1446 = vsyncadd [#allocation6], 4294965120 }
  0x49   :  { %1447 = dma.done.wait [#allocation9], 3072  }
  0x4a   :  { %1448 = vsyncadd [#allocation9], 4294964224  ;;  %v75_v0 = vld [vmem:[#allocation5] sm:$0xff]  ;;  %v76_v1 = vld [vmem:[#allocation5 + $0x8] sm:$0xff]  ;;  %vm1460_vm0 = vmmov 0   ;;  %s1462_s21 = smov [#allocation10]  }
  0x4b   :  { %v77_v2 = vld [vmem:[#allocation5 + $0x10] sm:$0xff]  ;;  %v124_v3 = vpack.c.bf16 %v76_v1, %v75_v0  ;;  %v78_v4 = vld [vmem:[#allocation5 + $0x18] sm:$0xff]  ;;  %v79_v6 = vld [vmem:[#allocation5 + $0x20] sm:$0xff]  ;;  %s942_s22 = sshll.u32 %s1462_s21, 4  ;;  %s943_s22 = int_to_ptr.vmem [resolvable:$true] %s942_s22 }
  0x4c   :  { %v125_v5 = vpack.c.bf16 %v78_v4, %v77_v2  ;;  %v80_v7 = vld [vmem:[#allocation5 + $0x28] sm:$0xff]  ;;  %v81_v8 = vld [vmem:[#allocation5 + $0x30] sm:$0xff]  ;;  %v82_v10 = vld [vmem:[#allocation5 + $0x38] sm:$0xff]  ;;  %p1426_p5 = scmp.lt.s32.totalorder %s943_s22, %s943_s22 }
  0x4d   :  { %1078 = vmatprep.subr.bf16.mxu0 %v124_v3  ;;  %v126_v9 = vpack.c.bf16 %v80_v7, %v79_v6  ;;  %v1297_v11 = vld [vmem:[#allocation2] sm:$0xff]   ;;  %v127_v12 = vpack.c.bf16 %v82_v10, %v81_v8  ;;  %v84_v14 = vld [vmem:[#allocation5 + $0x48] sm:$0xff]  ;;  %v85_v15 = vld [vmem:[#allocation5 + $0x50] sm:$0xff] }
  0x4e   :  { %1079 = vmatpush3.bf16.msra.mxu0 %v124_v3  ;;  %1094 = vmatprep.mubr.bf16.mxu0 %v1297_v11  ;;  %v83_v13 = vld [vmem:[#allocation5 + $0x40] sm:$0xff]  ;;  %v86_v17 = vld [vmem:[#allocation5 + $0x58] sm:$0xff]  ;;  %v1305_v18 = vld [vmem:[#allocation8] sm:$0xff]  }
  0x4f   :  { %1080 = vmatprep.subr.bf16.mxu0 %v125_v5  ;;  %v128_v16 = vpack.c.bf16 %v84_v14, %v83_v13  ;;  %v1306_v19 = vld [vmem:[#allocation8 + $0x8] sm:$0xff]   ;;  %v87_v20 = vld [vmem:[#allocation5 + $0x60] sm:$0xff]  ;;  %1110 = vmatprep.subr.bf16.mxu1 %v1305_v18  ;;  %v129_v21 = vpack.c.bf16 %v86_v17, %v85_v15  ;;  %v88_v22 = vld [vmem:[#allocation5 + $0x68] sm:$0xff] }
  0x50   :  { %1111 = vmatpush3.bf16.msra.mxu1 %v1305_v18  ;;  %v1307_v23 = vld [vmem:[#allocation8 + $0x10] sm:$0xff]   ;;  %v89_v24 = vld [vmem:[#allocation5 + $0x70] sm:$0xff]  ;;  %v1308_v26 = vld [vmem:[#allocation8 + $0x18] sm:$0xff]   ;;  %v130_v27 = vpack.c.bf16 %v88_v22, %v87_v20 }
  0x51   :  { %1112 = vmatprep.subr.bf16.mxu1 %v1306_v19  ;;  %v90_v25 = vld [vmem:[#allocation5 + $0x78] sm:$0xff]  ;;  %v1309_v28 = vld [vmem:[#allocation8 + $0x20] sm:$0xff]   ;;  %v1310_v30 = vld [vmem:[#allocation8 + $0x28] sm:$0xff]  }
  0x52   :  { %1081 = vmatpush3.bf16.msra.mxu0 %v125_v5  ;;  %v131_v29 = vpack.c.bf16 %v90_v25, %v89_v24  ;;  %v1554_v31 = vld [vmem:[#allocation2 + $0x8] sm:$0xff]   ;;  %v1556_v32 = vld [vmem:[#allocation2 + $0x10] sm:$0xff]   ;;  %v1311_v33 = vld [vmem:[#allocation8 + $0x30] sm:$0xff]  }
  0x53   :  { %1082 = vmatprep.subr.bf16.mxu0 %v126_v9  ;;  %v1560_v34 = vld [vmem:[#allocation2 + $0x18] sm:$0xff]   ;;  %v1562_v35 = vld [vmem:[#allocation2 + $0x20] sm:$0xff]   ;;  %v1566_v36 = vld [vmem:[#allocation2 + $0x28] sm:$0xff]  }
  0x54   :  { %1113 = vmatpush3.bf16.msra.mxu1 %v1306_v19  ;;  %v1568_v37 = vld [vmem:[#allocation2 + $0x30] sm:$0xff]   ;;  %v1572_v38 = vld [vmem:[#allocation2 + $0x38] sm:$0xff]   ;;  %v1312_v39 = vld [vmem:[#allocation8 + $0x38] sm:$0xff]  }
  0x55   :  { %1114 = vmatprep.subr.bf16.mxu1 %v1307_v23  ;;  %v1313_v0 = vld [vmem:[#allocation8 + $0x40] sm:$0xff]   ;;  %v1314_v1 = vld [vmem:[#allocation8 + $0x48] sm:$0xff]   ;;  %v1315_v2 = vld [vmem:[#allocation8 + $0x50] sm:$0xff]  }
  0x56   :  { %1083 = vmatpush3.bf16.msra.mxu0 %v126_v9  ;;  %v1316_v3 = vld [vmem:[#allocation8 + $0x58] sm:$0xff]   ;;  %v1317_v4 = vld [vmem:[#allocation8 + $0x60] sm:$0xff]   ;;  %v1318_v5 = vld [vmem:[#allocation8 + $0x68] sm:$0xff]  }
  0x57   :  { %1084 = vmatprep.subr.bf16.mxu0 %v127_v12  ;;  %v1319_v6 = vld [vmem:[#allocation8 + $0x70] sm:$0xff]   ;;  %v961_v7 = vld [vmem:[%s1615_s4] ss:$0 sm:$0xff] }
  0x58   :  { %1115 = vmatpush3.bf16.msra.mxu1 %v1307_v23 }
  0x59   :  { %1116 = vmatprep.subr.bf16.mxu1 %v1308_v26 }
  0x5a   :  { %1085 = vmatpush3.bf16.msra.mxu0 %v127_v12 }
  0x5b   :  { %1086 = vmatprep.subr.bf16.mxu0 %v128_v16 }
  0x5c   :  { %1117 = vmatpush3.bf16.msra.mxu1 %v1308_v26 }
  0x5d   :  { %1118 = vmatprep.subr.bf16.mxu1 %v1309_v28 }
  0x5e   :  { %1087 = vmatpush3.bf16.msra.mxu0 %v128_v16 }
  0x5f   :  { %1088 = vmatprep.subr.bf16.mxu0 %v129_v21 }
  0x60   :  { %1119 = vmatpush3.bf16.msra.mxu1 %v1309_v28 }
  0x61   :  { %1120 = vmatprep.subr.bf16.mxu1 %v1310_v30 }
  0x62   :  { %1089 = vmatpush3.bf16.msra.mxu0 %v129_v21 }
  0x63   :  { %1090 = vmatprep.subr.bf16.mxu0 %v130_v27 }
  0x64   :  { %1121 = vmatpush3.bf16.msra.mxu1 %v1310_v30 }
  0x65   :  { %1122 = vmatprep.subr.bf16.mxu1 %v1311_v33 }
  0x66   :  { %1091 = vmatpush3.bf16.msra.mxu0 %v130_v27 }
  0x67   :  { %1092 = vmatprep.subr.bf16.mxu0 %v131_v29 }
  0x68   :  { %1123 = vmatpush3.bf16.msra.mxu1 %v1311_v33 }
  0x69   :  { %1124 = vmatprep.subr.bf16.mxu1 %v1312_v39 }
  0x6a   :  { %1093 = vmatpush3.bf16.msra.mxu0 %v131_v29 }
  0x6c   :  { %1125 = vmatpush3.bf16.msra.mxu1 %v1312_v39 }
  0x6d   :  { %1095 = vmatmul.mubr.bf16.vlgmr.msra.gmra.mrb[0].mxu0 %v1554_v31  ;;  %1174 = vmatprep.subr.bf16.mxu1 %v1313_v0 }
  0x6e   :  { %1098 = vmatprep.mubr.bf16.mxu0 %v1556_v32 }
  0x75   :  { %1099 = vmatmul.mubr.bf16.gmra.mrb[4].mxu0 %v1560_v34 }
  0x76   :  { %1102 = vmatprep.mubr.bf16.mxu0 %v1562_v35 }
  0x7d   :  { %1103 = vmatmul.mubr.bf16.gmra.mrb[8].mxu0 %v1566_v36 }
  0x7e   :  { %1106 = vmatprep.mubr.bf16.mxu0 %v1568_v37 }
  0x85   :  { %1107 = vmatmul.mubr.bf16.gmra.mrb[12].mxu0 %v1572_v38 }
  0x86   :  { %1158 = vmatprep.mubr.bf16.mxu0 %v1297_v11 }
 0x140   :  { %v1096_v40 = vpop.f32.mrb[0].mxu0 }
 0x141   :  { %v214_v41 = vpop.f32.mrb[1].mxu0 }
 0x142   :  { %v1097_v42 = vpop.f32.mrb[2].mxu0 }
 0x143   :  { %v278_v43 = vpack.c.bf16 %v1097_v42, %v1096_v40  ;;  %v217_v44 = vpop.f32.mrb[3].mxu0 }
 0x144   :  { %v277_v45 = vpack.c.bf16 %v217_v44, %v214_v41 }
 0x146   :  { %1126 = vmatprep.mubr.bf16.mxu1 %v277_v45 }
 0x147   :  { %1127 = vmatmul.mubr.bf16.vlgmr.msra.gmra.mrb[0].mxu1 %v278_v43 }
 0x148   :  { %v1100_v46 = vpop.f32.mrb[4].mxu0  ;;  %1175 = vmatpush3.bf16.msra.mxu1 %v1313_v0 }
 0x149   :  { %v230_v47 = vpop.f32.mrb[5].mxu0  ;;  %1176 = vmatprep.subr.bf16.mxu1 %v1314_v1 }
 0x14a   :  { %v1101_v48 = vpop.f32.mrb[6].mxu0 }
 0x14b   :  { %v280_v49 = vpack.c.bf16 %v1101_v48, %v1100_v46  ;;  %v233_v50 = vpop.f32.mrb[7].mxu0 }
 0x14c   :  { %v279_v51 = vpack.c.bf16 %v233_v50, %v230_v47  ;;  %1177 = vmatpush3.bf16.msra.mxu1 %v1314_v1 }
 0x14d   :  { %1178 = vmatprep.subr.bf16.mxu1 %v1315_v2 }
 0x14e   :  { %1130 = vmatprep.mubr.bf16.mxu1 %v279_v51 }
 0x14f   :  { %1131 = vmatmul.mubr.bf16.gmra.mrb[4].mxu1 %v280_v49 }
 0x150   :  { %v1104_v52 = vpop.f32.mrb[8].mxu0  ;;  %1179 = vmatpush3.bf16.msra.mxu1 %v1315_v2 }
 0x151   :  { %v246_v53 = vpop.f32.mrb[9].mxu0  ;;  %1180 = vmatprep.subr.bf16.mxu1 %v1316_v3 }
 0x152   :  { %v1105_v54 = vpop.f32.mrb[10].mxu0 }
 0x153   :  { %v282_v55 = vpack.c.bf16 %v1105_v54, %v1104_v52  ;;  %v249_v56 = vpop.f32.mrb[11].mxu0 }
 0x154   :  { %v281_v57 = vpack.c.bf16 %v249_v56, %v246_v53  ;;  %1181 = vmatpush3.bf16.msra.mxu1 %v1316_v3 }
 0x155   :  { %1182 = vmatprep.subr.bf16.mxu1 %v1317_v4 }
 0x156   :  { %1134 = vmatprep.mubr.bf16.mxu1 %v281_v57 }
 0x157   :  { %1135 = vmatmul.mubr.bf16.gmra.mrb[8].mxu1 %v282_v55 }
 0x158   :  { %v1108_v58 = vpop.f32.mrb[12].mxu0  ;;  %1183 = vmatpush3.bf16.msra.mxu1 %v1317_v4 }
 0x159   :  { %v262_v59 = vpop.f32.mrb[13].mxu0  ;;  %1184 = vmatprep.subr.bf16.mxu1 %v1318_v5 }
 0x15a   :  { %v1109_v60 = vpop.f32.mrb[14].mxu0 }
 0x15b   :  { %v284_v61 = vpack.c.bf16 %v1109_v60, %v1108_v58  ;;  %v265_v62 = vpop.f32.mrb[15].mxu0 }
 0x15c   :  { %v283_v63 = vpack.c.bf16 %v265_v62, %v262_v59  ;;  %1185 = vmatpush3.bf16.msra.mxu1 %v1318_v5 }
 0x15d   :  { %1186 = vmatprep.subr.bf16.mxu1 %v1319_v6 }
 0x15e   :  { %1138 = vmatprep.mubr.bf16.mxu1 %v283_v63 }
 0x15f   :  { %1139 = vmatmul.mubr.bf16.gmra.mrb[12].mxu1 %v284_v61 }
 0x160   :  { %1187 = vmatpush3.bf16.msra.mxu1 %v1319_v6 }
 0x21a   :  { %v1128_v8 = vpop.f32.mrb[0].mxu1 }
 0x21b   :  { %v380_v9 = vadd.f32 %v1128_v8, %v961_v7  ;;  %v371_v10 = vpop.f32.mrb[1].mxu1 }
 0x21c   :  { %v372_v11 = vadd.f32 %v961_v7, %v371_v10  ;;  %v1129_v12 = vpop.f32.mrb[2].mxu1 }
 0x21d   :  { %v383_v13 = vadd.f32 %v1129_v12, %v961_v7  ;;  %v374_v14 = vpop.f32.mrb[3].mxu1  ;;  %v436_v16 = vmax.f32 %v380_v9, 0.0 }
 0x21e   :  { %v375_v15 = vadd.f32 %v961_v7, %v374_v14  ;;  %v434_v18 = vmax.f32 %v372_v11, 0.0 }
 0x21f   :  { %v437_v17 = vmax.f32 %v383_v13, 0.0 }
 0x220   :  { %v435_v19 = vmax.f32 %v375_v15, 0.0 }
 0x221   :  { %v468_v20 = vpack.c.bf16 %v437_v17, %v436_v16 }
 0x222   :  { %v467_v21 = vpack.c.bf16 %v435_v19, %v434_v18  ;;  %v1132_v22 = vpop.f32.mrb[4].mxu1 }
 0x223   :  { %v396_v23 = vadd.f32 %v1132_v22, %v961_v7  ;;  %v387_v24 = vpop.f32.mrb[5].mxu1 }
 0x224   :  { %v388_v25 = vadd.f32 %v961_v7, %v387_v24  ;;  %v1133_v26 = vpop.f32.mrb[6].mxu1  ;;  %1142 = vmatprep.subr.bf16.mxu0 %v467_v21 }
 0x225   :  { %v399_v27 = vadd.f32 %v1133_v26, %v961_v7  ;;  %v390_v28 = vpop.f32.mrb[7].mxu1  ;;  %1143 = vmatpush3.bf16.msra.mxu0 %v467_v21  ;;  %v440_v30 = vmax.f32 %v396_v23, 0.0  ;;  %v1461_v26 = vmov 0.0  }
 0x226   :  { %v391_v29 = vadd.f32 %v961_v7, %v390_v28  ;;  %1144 = vmatprep.subr.bf16.mxu0 %v468_v20  ;;  %v438_v39 = vmax.f32 %v388_v25, 0.0  ;;  %v1459_v25 = vmov 0.0|0.0   ;;  %v1322_v28 = vld [vmem:[#allocation8 + $0x88] sm:$0xff]  }
 0x227   :  { %v441_v33 = vmax.f32 %v399_v27, 0.0  ;;  %v1321_v27 = vld [vmem:[#allocation8 + $0x80] sm:$0xff]  }
 0x228   :  { %v439_v40 = vmax.f32 %v391_v29, 0.0  ;;  %v1323_v29 = vld [vmem:[#allocation8 + $0x90] sm:$0xff]  }
 0x229   :  { %v470_v41 = vpack.c.bf16 %v441_v33, %v440_v30  ;;  %1145 = vmatpush3.bf16.msra.mxu0 %v468_v20  ;;  %v1324_v30 = vld [vmem:[#allocation8 + $0x98] sm:$0xff]   ;;  %v1325_v33 = vld [vmem:[#allocation8 + $0xa0] sm:$0xff]  }
 0x22a   :  { %v469_v42 = vpack.c.bf16 %v439_v40, %v438_v39  ;;  %v1136_v43 = vpop.f32.mrb[8].mxu1  ;;  %v1326_v39 = vld [vmem:[#allocation8 + $0xa8] sm:$0xff]   ;;  %v1327_v40 = vld [vmem:[#allocation8 + $0xb0] sm:$0xff]  }
 0x22b   :  { %v412_v44 = vadd.f32 %v1136_v43, %v961_v7  ;;  %v403_v45 = vpop.f32.mrb[9].mxu1 }
 0x22c   :  { %v404_v46 = vadd.f32 %v961_v7, %v403_v45  ;;  %v1137_v47 = vpop.f32.mrb[10].mxu1  ;;  %1146 = vmatprep.subr.bf16.mxu0 %v469_v42 }
 0x22d   :  { %v415_v48 = vadd.f32 %v1137_v47, %v961_v7  ;;  %v406_v49 = vpop.f32.mrb[11].mxu1  ;;  %1147 = vmatpush3.bf16.msra.mxu0 %v469_v42  ;;  %v444_v51 = vmax.f32 %v412_v44, 0.0 }
 0x22e   :  { %v407_v50 = vadd.f32 %v961_v7, %v406_v49  ;;  %1148 = vmatprep.subr.bf16.mxu0 %v470_v41  ;;  %v442_v53 = vmax.f32 %v404_v46, 0.0 }
 0x22f   :  { %v445_v52 = vmax.f32 %v415_v48, 0.0 }
 0x230   :  { %v443_v54 = vmax.f32 %v407_v50, 0.0 }
 0x231   :  { %v472_v55 = vpack.c.bf16 %v445_v52, %v444_v51  ;;  %1149 = vmatpush3.bf16.msra.mxu0 %v470_v41  ;;  %v970_v41 = vld [vmem:[%s1615_s4 + $0x1] ss:$0 sm:$0xff] }
 0x232   :  { %v471_v56 = vpack.c.bf16 %v443_v54, %v442_v53  ;;  %v1140_v57 = vpop.f32.mrb[12].mxu1 }
 0x233   :  { %v428_v58 = vadd.f32 %v1140_v57, %v961_v7  ;;  %v419_v59 = vpop.f32.mrb[13].mxu1 }
 0x234   :  { %v420_v60 = vadd.f32 %v961_v7, %v419_v59  ;;  %v1141_v61 = vpop.f32.mrb[14].mxu1  ;;  %1150 = vmatprep.subr.bf16.mxu0 %v471_v56 }
 0x235   :  { %v431_v62 = vadd.f32 %v1141_v61, %v961_v7  ;;  %v422_v63 = vpop.f32.mrb[15].mxu1  ;;  %1151 = vmatpush3.bf16.msra.mxu0 %v471_v56  ;;  %v448_v1 = vmax.f32 %v428_v58, 0.0 }
 0x236   :  { %v423_v0 = vadd.f32 %v961_v7, %v422_v63  ;;  %1152 = vmatprep.subr.bf16.mxu0 %v472_v55  ;;  %v446_v3 = vmax.f32 %v420_v60, 0.0  ;;  %v1320_v7 = vld [vmem:[#allocation8 + $0x78] sm:$0xff]  }
 0x237   :  { %v449_v2 = vmax.f32 %v431_v62, 0.0  ;;  %1188 = vmatprep.subr.bf16.mxu1 %v1320_v7 }
 0x238   :  { %v447_v4 = vmax.f32 %v423_v0, 0.0  ;;  %1189 = vmatpush3.bf16.msra.mxu1 %v1320_v7 }
 0x239   :  { %v474_v5 = vpack.c.bf16 %v449_v2, %v448_v1  ;;  %1153 = vmatpush3.bf16.msra.mxu0 %v472_v55  ;;  %1241 = vmatprep.subr.bf16.mxu1 %v1461_v26 }
 0x23a   :  { %v473_v6 = vpack.c.bf16 %v447_v4, %v446_v3 }
 0x23c   :  { %1154 = vmatprep.subr.bf16.mxu0 %v473_v6 }
 0x23d   :  { %1155 = vmatpush3.bf16.msra.mxu0 %v473_v6 }
 0x23e   :  { %1156 = vmatprep.subr.bf16.mxu0 %v474_v5 }
 0x241   :  { %1157 = vmatpush3.bf16.msra.mxu0 %v474_v5 }
 0x242   :  { %1261 = vmatprep.subr.bf16.mxu0 %v1459_v25 }
 0x244   :  { %1159 = vmatmul.mubr.bf16.vlgmr.msra.gmra.mrb[16].mxu0 %v1554_v31 }
 0x245   :  { %1162 = vmatprep.mubr.bf16.mxu0 %v1556_v32 }
 0x24c   :  { %1163 = vmatmul.mubr.bf16.gmra.mrb[20].mxu0 %v1560_v34 }
 0x24d   :  { %1166 = vmatprep.mubr.bf16.mxu0 %v1562_v35 }
 0x254   :  { %1167 = vmatmul.mubr.bf16.gmra.mrb[24].mxu0 %v1566_v36 }
 0x255   :  { %1170 = vmatprep.mubr.bf16.mxu0 %v1568_v37 }
 0x25c   :  { %1171 = vmatmul.mubr.bf16.gmra.mrb[28].mxu0 %v1572_v38 }
 0x25d   :  { %1238 = vmatprep.mubr.msk.f32.mxu0 %vm1460_vm0, %v1461_v26 }
 0x317   :  { %v1160_v8 = vpop.f32.mrb[16].mxu0 }
 0x318   :  { %v509_v9 = vpop.f32.mrb[17].mxu0 }
 0x319   :  { %v1161_v10 = vpop.f32.mrb[18].mxu0 }
 0x31a   :  { %v573_v11 = vpack.c.bf16 %v1161_v10, %v1160_v8  ;;  %v512_v31 = vpop.f32.mrb[19].mxu0 }
 0x31b   :  { %v572_v12 = vpack.c.bf16 %v512_v31, %v509_v9 }
 0x31d   :  { %1190 = vmatprep.mubr.bf16.mxu1 %v572_v12 }
 0x31e   :  { %1191 = vmatmul.mubr.bf16.vlgmr.msra.gmra.mrb[16].mxu1 %v573_v11 }
 0x31f   :  { %v1164_v32 = vpop.f32.mrb[20].mxu0  ;;  %1242 = vmatpush3.bf16.msra.mxu1 %v1321_v27 }
 0x320   :  { %v525_v34 = vpop.f32.mrb[21].mxu0  ;;  %1243 = vmatprep.subr.bf16.mxu1 %v1461_v26 }
 0x321   :  { %v1165_v35 = vpop.f32.mrb[22].mxu0 }
 0x322   :  { %v575_v13 = vpack.c.bf16 %v1165_v35, %v1164_v32  ;;  %v528_v36 = vpop.f32.mrb[23].mxu0 }
 0x323   :  { %v574_v14 = vpack.c.bf16 %v528_v36, %v525_v34  ;;  %1244 = vmatpush3.bf16.msra.mxu1 %v1322_v28  ;;  %v762_v28 = vld [vmem:[#allocation7] sm:$0xff] }
 0x324   :  { %1245 = vmatprep.subr.bf16.mxu1 %v1461_v26 }
 0x325   :  { %1194 = vmatprep.mubr.bf16.mxu1 %v574_v14 }
 0x326   :  { %1195 = vmatmul.mubr.bf16.gmra.mrb[20].mxu1 %v575_v13 }
 0x327   :  { %v1168_v37 = vpop.f32.mrb[24].mxu0  ;;  %1246 = vmatpush3.bf16.msra.mxu1 %v1323_v29  ;;  %v1328_v29 = vld [vmem:[#allocation8 + $0xb8] sm:$0xff]  }
 0x328   :  { %v541_v38 = vpop.f32.mrb[25].mxu0  ;;  %1247 = vmatprep.subr.bf16.mxu1 %v1461_v26 }
 0x329   :  { %v1169_v15 = vpop.f32.mrb[26].mxu0 }
 0x32a   :  { %v577_v16 = vpack.c.bf16 %v1169_v15, %v1168_v37  ;;  %v544_v17 = vpop.f32.mrb[27].mxu0 }
 0x32b   :  { %v576_v18 = vpack.c.bf16 %v544_v17, %v541_v38  ;;  %1248 = vmatpush3.bf16.msra.mxu1 %v1324_v30 }
 0x32c   :  { %1249 = vmatprep.subr.bf16.mxu1 %v1461_v26 }
 0x32d   :  { %1198 = vmatprep.mubr.bf16.mxu1 %v576_v18 }
 0x32e   :  { %1199 = vmatmul.mubr.bf16.gmra.mrb[24].mxu1 %v577_v16 }
 0x32f   :  { %v1172_v19 = vpop.f32.mrb[28].mxu0  ;;  %1250 = vmatpush3.bf16.msra.mxu1 %v1325_v33 }
 0x330   :  { %v557_v20 = vpop.f32.mrb[29].mxu0  ;;  %1251 = vmatprep.subr.bf16.mxu1 %v1461_v26 }
 0x331   :  { %v1173_v21 = vpop.f32.mrb[30].mxu0 }
 0x332   :  { %v579_v22 = vpack.c.bf16 %v1173_v21, %v1172_v19  ;;  %v560_v23 = vpop.f32.mrb[31].mxu0 }
 0x333   :  { %v578_v24 = vpack.c.bf16 %v560_v23, %v557_v20  ;;  %1252 = vmatpush3.bf16.msra.mxu1 %v1326_v39 }
 0x334   :  { %1253 = vmatprep.subr.bf16.mxu1 %v1461_v26 }
 0x335   :  { %1202 = vmatprep.mubr.bf16.mxu1 %v578_v24 }
 0x336   :  { %1203 = vmatmul.mubr.bf16.gmra.mrb[28].mxu1 %v579_v22 }
 0x337   :  { %1257 = vmatprep.mubr.msk.bf16.mxu1 %vm1460_vm0, %v1461_v26  ;;  %1254 = vmatpush3.bf16.msra.mxu1 %v1327_v40  ;;  %v979_v40 = vld [vmem:[%s1615_s4 + $0x2] ss:$0 sm:$0xff]  ;;  %s1421_s4 = scalar_lea.vmem %s943_s22, 128 }
 0x338   :  { %1255 = vmatprep.subr.bf16.mxu1 %v1461_v26  ;;  %p1422_p4 = scmp.ne.s32.totalorder %s943_s22, %s1421_s4  ;;  %p1427_p6 = scmp.lt.s32.totalorder %s1421_s4, %s1421_s4 }
 0x33a   :  { %p1428_p7 = por %p1427_p6, %p1426_p5 }
 0x33b   :  { %1256 = vmatpush3.bf16.msra.mxu1 %v1328_v29 }
 0x33c   :  { %p1429_p8 = pnand %p1428_p7, %p1422_p4 }
 0x3f1   :  { %v1192_v42 = vpop.f32.mrb[16].mxu1 }
 0x3f2   :  { %v675_v43 = vadd.f32 %v1192_v42, %v970_v41  ;;  %v666_v44 = vpop.f32.mrb[17].mxu1 }
 0x3f3   :  { %v667_v45 = vadd.f32 %v970_v41, %v666_v44  ;;  %v1193_v46 = vpop.f32.mrb[18].mxu1 }
 0x3f4   :  { %v678_v47 = vadd.f32 %v1193_v46, %v970_v41  ;;  %v669_v48 = vpop.f32.mrb[19].mxu1  ;;  %v731_v50 = vmax.f32 %v675_v43, 0.0 }
 0x3f5   :  { %v670_v49 = vadd.f32 %v970_v41, %v669_v48  ;;  %v729_v52 = vmax.f32 %v667_v45, 0.0 }
 0x3f6   :  { %v732_v51 = vmax.f32 %v678_v47, 0.0 }
 0x3f7   :  { %v730_v53 = vmax.f32 %v670_v49, 0.0 }
 0x3f8   :  { %v1265_v54 = vpack.c.bf16 %v732_v51, %v731_v50 }
 0x3f9   :  { %v1262_v55 = vpack.c.bf16 %v730_v53, %v729_v52  ;;  %v1196_v56 = vpop.f32.mrb[20].mxu1 }
 0x3fa   :  { %v691_v57 = vadd.f32 %v1196_v56, %v970_v41  ;;  %v682_v58 = vpop.f32.mrb[21].mxu1 }
 0x3fb   :  { %v683_v59 = vadd.f32 %v970_v41, %v682_v58  ;;  %v1197_v60 = vpop.f32.mrb[22].mxu1  ;;  %1263 = vmatpush3.bf16.msra.mxu0 %v1262_v55 }
 0x3fc   :  { %v694_v61 = vadd.f32 %v1197_v60, %v970_v41  ;;  %v685_v62 = vpop.f32.mrb[23].mxu1  ;;  %1264 = vmatprep.subr.bf16.mxu0 %v1459_v25  ;;  %v735_v0 = vmax.f32 %v691_v57, 0.0 }
 0x3fd   :  { %v686_v63 = vadd.f32 %v970_v41, %v685_v62  ;;  %v733_v2 = vmax.f32 %v683_v59, 0.0 }
 0x3fe   :  { %v736_v1 = vmax.f32 %v694_v61, 0.0 }
 0x3ff   :  { %v734_v3 = vmax.f32 %v686_v63, 0.0  ;;  %1266 = vmatpush3.bf16.msra.mxu0 %v1265_v54 }
 0x400   :  { %v1271_v4 = vpack.c.bf16 %v736_v1, %v735_v0  ;;  %1267 = vmatprep.subr.bf16.mxu0 %v1459_v25 }
 0x401   :  { %v1268_v5 = vpack.c.bf16 %v734_v3, %v733_v2  ;;  %v1200_v6 = vpop.f32.mrb[24].mxu1 }
 0x402   :  { %v707_v7 = vadd.f32 %v1200_v6, %v970_v41  ;;  %v698_v8 = vpop.f32.mrb[25].mxu1 }
 0x403   :  { %v699_v9 = vadd.f32 %v970_v41, %v698_v8  ;;  %v1201_v10 = vpop.f32.mrb[26].mxu1  ;;  %1269 = vmatpush3.bf16.msra.mxu0 %v1268_v5 }
 0x404   :  { %v710_v11 = vadd.f32 %v1201_v10, %v970_v41  ;;  %v701_v31 = vpop.f32.mrb[27].mxu1  ;;  %1270 = vmatprep.subr.bf16.mxu0 %v1459_v25  ;;  %v739_v32 = vmax.f32 %v707_v7, 0.0 }
 0x405   :  { %v702_v12 = vadd.f32 %v970_v41, %v701_v31  ;;  %v737_v35 = vmax.f32 %v699_v9, 0.0 }
 0x406   :  { %v740_v34 = vmax.f32 %v710_v11, 0.0 }
 0x407   :  { %v738_v13 = vmax.f32 %v702_v12, 0.0  ;;  %1272 = vmatpush3.bf16.msra.mxu0 %v1271_v4 }
 0x408   :  { %v1277_v36 = vpack.c.bf16 %v740_v34, %v739_v32  ;;  %1273 = vmatprep.subr.bf16.mxu0 %v1459_v25 }
 0x409   :  { %v1274_v14 = vpack.c.bf16 %v738_v13, %v737_v35  ;;  %v1204_v37 = vpop.f32.mrb[28].mxu1 }
 0x40a   :  { %v723_v38 = vadd.f32 %v1204_v37, %v970_v41  ;;  %v714_v15 = vpop.f32.mrb[29].mxu1 }
 0x40b   :  { %v715_v16 = vadd.f32 %v970_v41, %v714_v15  ;;  %v1205_v17 = vpop.f32.mrb[30].mxu1  ;;  %1275 = vmatpush3.bf16.msra.mxu0 %v1274_v14 }
 0x40c   :  { %v726_v18 = vadd.f32 %v1205_v17, %v970_v41  ;;  %v717_v19 = vpop.f32.mrb[31].mxu1  ;;  %1276 = vmatprep.subr.bf16.mxu0 %v1459_v25  ;;  %v743_v21 = vmax.f32 %v723_v38, 0.0 }
 0x40d   :  { %v718_v20 = vadd.f32 %v970_v41, %v717_v19  ;;  %v741_v23 = vmax.f32 %v715_v16, 0.0 }
 0x40e   :  { %v744_v22 = vmax.f32 %v726_v18, 0.0 }
 0x40f   :  { %v742_v24 = vmax.f32 %v718_v20, 0.0  ;;  %1278 = vmatpush3.bf16.msra.mxu0 %v1277_v36 }
 0x410   :  { %v1283_v26 = vpack.c.bf16 %v744_v22, %v743_v21  ;;  %1279 = vmatprep.subr.bf16.mxu0 %v1459_v25 }
 0x411   :  { %v1280_v27 = vpack.c.bf16 %v742_v24, %v741_v23 }
 0x413   :  { %1281 = vmatpush3.bf16.msra.mxu0 %v1280_v27 }
 0x414   :  { %1282 = vmatprep.subr.bf16.mxu0 %v1459_v25 }
 0x417   :  { %1284 = vmatpush3.bf16.msra.mxu0 %v1283_v26 }
 0x41a   :  { %1239 = vmatmul.mubr.f32.vlgmr.msra.gmra.mrb[32].mxu0 %v762_v28 }
 0x4ed   :  { %v829_v30 = vpop.f32.mrb[32].mxu0 }
 0x4ee   :  { %v833_v33 = vpack.c.bf16 %v829_v30, %v829_v30  ;;  %v1240_v39 = vpop.f32.mrb[33].mxu0 }
 0x4f0   :  { %1258 = vmatmul.mubr.bf16.vlgmr.msra.gmra.mrb[32].mxu1 %v833_v33 }
 0x5c3   :  { %v920_v41 = vpop.f32.mrb[32].mxu1 }
 0x5c4   :  { %v921_v42 = vadd.f32 %v979_v40, %v920_v41  ;;  %v1259_v43 = vpop.f32.mrb[33].mxu1 }
 0x5c5   :  { %v923_v44 = vpop.f32.mrb[34].mxu1 }
 0x5c6   :  { %926 = vmax.xlane.f32.xlu0 %v921_v42  ;;  %v1260_v45 = vpop.f32.mrb[35].mxu1 }
 0x653   :  { %v927_v25 = vpop.xlane.xlu0 %926 }
 0x654   :  { %v928_v46 = vsub.f32 %v921_v42, %v927_v25 }
 0x656   :  { %v929_v47 = vmul.f32 1.442695, %v928_v46 }
 0x658   :  { %1329 = vpow2.f32 %v929_v47 }
 0x662   :  { %v1330_v48 = vpop.eup %1329 }
 0x663   :  { %931 = vadd.xlane.f32.xlu0 %v1330_v48 }
 0x6f0   :  { %v932_v49 = vpop.xlane.xlu0 %931 }
 0x6f1   :  { %1331 = vrcp.f32 %v932_v49 }
 0x6fb   :  { %v1332_v50 = vpop.eup %1331 }
 0x6fc   :  { %v934_v51 = vmul.f32 %v1332_v50, %v1330_v48 }
 0x6fe   :  { %935 = vst [vmem:[#allocation10] sm:$0xff] %v934_v51 }
 0x6ff   :  { %1432 = shalt.err (!%p1429_p8)
}
 0x700   :  { %s1433_s25 = scalar_lea.hbm %s1616_s5, 128 }
 0x701   :  { %p1434_p9 = scmp.ne.s32.totalorder %s1616_s5, %s1433_s25  ;;  %p1437_p10 = scmp.lt.u32.totalorder %s1433_s25, %s1616_s5 }
 0x703   :  { %p1439_p11 = pnand %p1437_p10, %p1434_p9 }
 0x705   :  { %1442 = shalt.err (!%p1439_p11)
}
 0x706   :  { %945 = dma.vmem_to_hbm [thread:$0]  %s943_s22, 128, %s1616_s5, [#allocation4]  }
 0x707   :  { %1449 = dma.done.wait [#allocation4], 128  }
 0x708   :  { %1450 = vsyncadd [#allocation4], 4294967168 }
 0x709   :  { %949 = vsyncpa [#allocation3], 1 }
 0x70a   :  { %950 = vsyncpa [#allocation6], 1 }
 0x70b   :  { %951 = vsyncpa [#allocation9], 1 }
 0x70c   :  { %952 = vsyncpa [#allocation4], 1 }

</bundles_post_ra>
